<compile_context>
chip_gen: v7x
topology: tpu7x:2x2x1
jax: 0.10.0
libtpu: 0.0.40
codegen_flags: <defaults>
</compile_context>

<pallas_src>
import math

import jax
import jax.numpy as jnp
from jax.experimental import pallas as pl
from jax.experimental.pallas import tpu as pltpu


def _round_up(v, m):
    return ((v + m - 1) // m) * m


def _embed_fc_kernel(x_ref, w1_ref, b1_ref, w2_ref, b2_ref, o_ref):
    # x_ref: (TN, K_pad) bf16, w1_ref: (K_pad, E_pad) bf16, b1_ref: (1, E_pad) f32
    # w2_ref: (E_pad, E_pad) bf16, b2_ref: (1, E_pad) f32, o_ref: (TN, E_pad) f32

    # ---- Linear 1: bf16 MXU matmul, f32 accumulation ----
    h = jnp.dot(x_ref[...], w1_ref[...], preferred_element_type=jnp.float32)
    h = h + b1_ref[...]  # f32 bias add on VPU

    # ---- GELU (exact erf form, matching PyTorch nn.GELU() default), in f32 ----
    inv_sqrt2 = jnp.float32(1.0 / math.sqrt(2.0))
    h = 0.5 * h * (1.0 + jax.lax.erf(h * inv_sqrt2))

    # ---- Linear 2: bf16 MXU matmul, f32 accumulation ----
    out = jnp.dot(h.astype(w2_ref.dtype), w2_ref[...],
                  preferred_element_type=jnp.float32)
    out = out + b2_ref[...]

    o_ref[...] = out.astype(o_ref.dtype)


def embed_fc(x2d, w1, b1, w2, b2, *, tile_n=512):
    """x2d: (N, input_dim); w1: (input_dim, emb); b1: (1, emb);
    w2: (emb, emb); b2: (1, emb). Returns (N, emb) in x2d.dtype."""
    n, k = x2d.shape
    e = w2.shape[1]

    # Lane/sublane-friendly padded sizes.
    k_pad = _round_up(k, 128)
    e_pad = _round_up(e, 128)
    tn = min(tile_n, _round_up(n, 8))
    n_pad = _round_up(n, tn)

    # Zero-padding keeps the math exact (padded K rows/cols contribute 0,
    # padded E columns stay 0 through GELU and are sliced off below).
    xp = jnp.zeros((n_pad, k_pad), jnp.bfloat16).at[:n, :k].set(
        x2d.astype(jnp.bfloat16))
    w1p = jnp.zeros((k_pad, e_pad), jnp.bfloat16).at[:k, :e].set(
        w1.astype(jnp.bfloat16))
    b1p = jnp.zeros((1, e_pad), jnp.float32).at[:, :e].set(
        b1.astype(jnp.float32))
    w2p = jnp.zeros((e_pad, e_pad), jnp.bfloat16).at[:e, :e].set(
        w2.astype(jnp.bfloat16))
    b2p = jnp.zeros((1, e_pad), jnp.float32).at[:, :e].set(
        b2.astype(jnp.float32))

    grid = (n_pad // tn,)
    bytes_accessed = (xp.size * 2 + w1p.size * 2 + w2p.size * 2
                      + b1p.size * 4 + b2p.size * 4 + n_pad * e_pad * 4)

    out = pl.pallas_call(
        _embed_fc_kernel,
        out_shape=jax.ShapeDtypeStruct((n_pad, e_pad), jnp.float32),
        grid=grid,
        in_specs=[
            pl.BlockSpec((tn, k_pad), lambda i: (i, 0)),       # x: row-tiled
            pl.BlockSpec((k_pad, e_pad), lambda i: (0, 0)),    # w1: resident
            pl.BlockSpec((1, e_pad), lambda i: (0, 0)),        # b1: resident
            pl.BlockSpec((e_pad, e_pad), lambda i: (0, 0)),    # w2: resident
            pl.BlockSpec((1, e_pad), lambda i: (0, 0)),        # b2: resident
        ],
        out_specs=pl.BlockSpec((tn, e_pad), lambda i: (i, 0)),
        compiler_params=pltpu.CompilerParams(
            dimension_semantics=("parallel",)),
        cost_estimate=pl.CostEstimate(
            flops=2 * n_pad * e_pad * (k_pad + e_pad),
            transcendentals=n_pad * e_pad,
            bytes_accessed=bytes_accessed),
    )(xp, w1p, b1p, w2p, b2p)

    return out[:n, :e].astype(x2d.dtype)


class EmbedFCPallas:
    """Mirrors models/unet.py::EmbedFC forward semantics (Linear-GELU-Linear)."""

    def __init__(self, input_dim, emb_dim, key):
        self.input_dim = input_dim
        self.emb_dim = emb_dim
        k1, k2, k3, k4 = jax.random.split(key, 4)
        # Deterministic init mimicking nn.Linear default U[-1/sqrt(fan_in), +1/sqrt(fan_in)].
        bnd1 = 1.0 / math.sqrt(input_dim)
        bnd2 = 1.0 / math.sqrt(emb_dim)
        self.w1 = jax.random.uniform(k1, (input_dim, emb_dim), jnp.float32, -bnd1, bnd1)
        self.b1 = jax.random.uniform(k2, (1, emb_dim), jnp.float32, -bnd1, bnd1)
        self.w2 = jax.random.uniform(k3, (emb_dim, emb_dim), jnp.float32, -bnd2, bnd2)
        self.b2 = jax.random.uniform(k4, (1, emb_dim), jnp.float32, -bnd2, bnd2)

    def __call__(self, x):
        # Glue: PyTorch's x.view(-1, input_dim)
        x2d = x.reshape(-1, self.input_dim)
        return embed_fc(x2d, self.w1, self.b1, self.w2, self.b2)


if __name__ == "__main__":
    key = jax.random.PRNGKey(0)
    k_x, k_p = jax.random.split(key)

    # Small shapes consistent with the module: x of shape (2, 4, 16) flattens
    # to (-1, input_dim) with input_dim = 4 * 16 = 64; emb_dim = 32.
    input_dim = 64
    emb_dim = 32
    x = jax.random.normal(k_x, (2, 4, 16), dtype=jnp.float32)

    module = EmbedFCPallas(input_dim, emb_dim, k_p)
    out = module(x)
    out = jax.block_until_ready(out)

    # Pure-JAX reference mirroring the kernel's bf16-operand / f32-accumulate path.
    x2d = x.reshape(-1, input_dim)
    h_ref = jnp.dot(x2d.astype(jnp.bfloat16), module.w1.astype(jnp.bfloat16),
                    preferred_element_type=jnp.float32) + module.b1
    h_ref = 0.5 * h_ref * (1.0 + jax.lax.erf(h_ref / jnp.sqrt(2.0)))
    ref = jnp.dot(h_ref.astype(jnp.bfloat16), module.w2.astype(jnp.bfloat16),
                  preferred_element_type=jnp.float32) + module.b2

    assert out.shape == (2, emb_dim), out.shape
    assert jnp.allclose(out, ref, atol=1e-3, rtol=1e-3)

    print("KERNEL_OK")
</pallas_src>

<mosaic_0001>
module attributes {stable_mosaic.version = 11 : i64} {
  func.func @_embed_fc_kernel(%arg0: i32, %arg1: memref<8x128xbf16, #tpu.memory_space<vmem>>, %arg2: memref<128x128xbf16, #tpu.memory_space<vmem>>, %arg3: memref<1x128xf32, #tpu.memory_space<vmem>>, %arg4: memref<128x128xbf16, #tpu.memory_space<vmem>>, %arg5: memref<1x128xf32, #tpu.memory_space<vmem>>, %arg6: memref<8x128xf32, #tpu.memory_space<vmem>>) attributes {dimension_semantics = [#tpu.dimension_semantics<parallel>], iteration_bounds = array<i64: 1>, scalar_prefetch = 0 : i64, scratch_operands = 0 : i64, tpu.core_type = #tpu.core_type<tc>, window_params = [{transform_indices = @transform_0, window_bounds = array<i64: 8, 128>}, {pipeline_mode = #tpu.pipeline_mode<synchronous>, transform_indices = @transform_1, window_bounds = array<i64: 128, 128>}, {pipeline_mode = #tpu.pipeline_mode<synchronous>, transform_indices = @transform_2, window_bounds = array<i64: 1, 128>}, {pipeline_mode = #tpu.pipeline_mode<synchronous>, transform_indices = @transform_3, window_bounds = array<i64: 128, 128>}, {pipeline_mode = #tpu.pipeline_mode<synchronous>, transform_indices = @transform_4, window_bounds = array<i64: 1, 128>}, {transform_indices = @transform_5, window_bounds = array<i64: 8, 128>}]} {
    %c0 = arith.constant 0 : index
    %c0_0 = arith.constant 0 : index
    %0 = vector.load %arg1[%c0, %c0_0] : memref<8x128xbf16, #tpu.memory_space<vmem>>, vector<8x128xbf16>
    %c0_1 = arith.constant 0 : index
    %c0_2 = arith.constant 0 : index
    %1 = vector.load %arg2[%c0_1, %c0_2] : memref<128x128xbf16, #tpu.memory_space<vmem>>, vector<128x128xbf16>
    %cst = arith.constant dense<0.000000e+00> : vector<8x128xf32>
    %2 = tpu.matmul %0, %1, %cst {dimension_numbers = #tpu.dot_dimension_numbers<[1], [0], [0], [1], [0, 0, 1, 1], [], []>} : vector<8x128xbf16>, vector<128x128xbf16>, vector<8x128xf32> -> vector<8x128xf32>
    %c0_3 = arith.constant 0 : index
    %c0_4 = arith.constant 0 : index
    %3 = vector.load %arg3[%c0_3, %c0_4] : memref<1x128xf32, #tpu.memory_space<vmem>>, vector<1x128xf32>
    %4 = vector.broadcast %3 : vector<1x128xf32> to vector<8x128xf32>
    %5 = arith.addf %2, %4 : vector<8x128xf32>
    %cst_5 = arith.constant 5.000000e-01 : f32
    %6 = vector.broadcast %cst_5 : f32 to vector<8x128xf32>
    %7 = arith.mulf %6, %5 : vector<8x128xf32>
    %cst_6 = arith.constant 0.707106769 : f32
    %8 = vector.broadcast %cst_6 : f32 to vector<8x128xf32>
    %9 = arith.mulf %5, %8 : vector<8x128xf32>
    %10 = math.erf %9 : vector<8x128xf32>
    %cst_7 = arith.constant 1.000000e+00 : f32
    %11 = vector.broadcast %cst_7 : f32 to vector<8x128xf32>
    %12 = arith.addf %11, %10 : vector<8x128xf32>
    %13 = arith.mulf %7, %12 : vector<8x128xf32>
    %14 = arith.truncf %13 : vector<8x128xf32> to vector<8x128xbf16>
    %c0_8 = arith.constant 0 : index
    %c0_9 = arith.constant 0 : index
    %15 = vector.load %arg4[%c0_8, %c0_9] : memref<128x128xbf16, #tpu.memory_space<vmem>>, vector<128x128xbf16>
    %cst_10 = arith.constant dense<0.000000e+00> : vector<8x128xf32>
    %16 = tpu.matmul %14, %15, %cst_10 {dimension_numbers = #tpu.dot_dimension_numbers<[1], [0], [0], [1], [0, 0, 1, 1], [], []>} : vector<8x128xbf16>, vector<128x128xbf16>, vector<8x128xf32> -> vector<8x128xf32>
    %c0_11 = arith.constant 0 : index
    %c0_12 = arith.constant 0 : index
    %17 = vector.load %arg5[%c0_11, %c0_12] : memref<1x128xf32, #tpu.memory_space<vmem>>, vector<1x128xf32>
    %18 = vector.broadcast %17 : vector<1x128xf32> to vector<8x128xf32>
    %19 = arith.addf %16, %18 : vector<8x128xf32>
    %c0_13 = arith.constant 0 : index
    %c0_14 = arith.constant 0 : index
    %20 = vector.load %arg6[%c0_13, %c0_14] : memref<8x128xf32, #tpu.memory_space<vmem>>, vector<8x128xf32>
    tpu.vector_store %arg6[%c0_13, %c0_14], %19 {strides = array<i32>} : memref<8x128xf32, #tpu.memory_space<vmem>>, vector<8x128xf32>,
    return
  }
  func.func @transform_0(%arg0: i32) -> (i32, i32) {
    %c0_i32 = arith.constant 0 : i32
    %c0_i32_0 = arith.constant 0 : i32
    return %arg0, %c0_i32 : i32, i32
  }
  func.func @transform_1(%arg0: i32) -> (i32, i32) {
    %c0_i32 = arith.constant 0 : i32
    %c0_i32_0 = arith.constant 0 : i32
    %c0_i32_1 = arith.constant 0 : i32
    return %c0_i32, %c0_i32_0 : i32, i32
  }
  func.func @transform_2(%arg0: i32) -> (i32, i32) {
    %c0_i32 = arith.constant 0 : i32
    %c0_i32_0 = arith.constant 0 : i32
    %c0_i32_1 = arith.constant 0 : i32
    return %c0_i32, %c0_i32_0 : i32, i32
  }
  func.func @transform_3(%arg0: i32) -> (i32, i32) {
    %c0_i32 = arith.constant 0 : i32
    %c0_i32_0 = arith.constant 0 : i32
    %c0_i32_1 = arith.constant 0 : i32
    return %c0_i32, %c0_i32_0 : i32, i32
  }
  func.func @transform_4(%arg0: i32) -> (i32, i32) {
    %c0_i32 = arith.constant 0 : i32
    %c0_i32_0 = arith.constant 0 : i32
    %c0_i32_1 = arith.constant 0 : i32
    return %c0_i32, %c0_i32_0 : i32, i32
  }
  func.func @transform_5(%arg0: i32) -> (i32, i32) {
    %c0_i32 = arith.constant 0 : i32
    %c0_i32_0 = arith.constant 0 : i32
    return %arg0, %c0_i32 : i32, i32
  }
}

</mosaic_0001>

<bundles_post_ra>
// kernel: tpu_custom_call.1
= control target key start
LH: loop header
LB: loop body
LE: loop exit
PB: predicated region body
PF: predicated region fallthrough
CT: control target
= control target key end

     0   :  { %10 = vsyncpa [#allocation3], 0  ;;  %s601_s0 = inlined_call_operand.hbm [shape: bf16[8,128], index: 0, kind: input, shape index: {}]   ;;  %s602_s1 = inlined_call_operand.hbm [shape: bf16[128,128], index: 1, kind: input, shape index: {}]   ;;  %s603_s2 = inlined_call_operand.vmem [shape: f32[1,128], index: 2, kind: input, shape index: {}]   ;;  %s604_s3 = inlined_call_operand.hbm [shape: bf16[128,128], index: 3, kind: input, shape index: {}]   ;;  %s605_s4 = inlined_call_operand.vmem [shape: f32[1,128], index: 4, kind: input, shape index: {}]   ;;  %s606_s5 = inlined_call_operand.hbm [shape: f32[8,128], index: 5, kind: output, shape index: {}]  }
   0x1   :  { %11 = vsyncpa [#allocation6], 0 }
   0x2   :  { %12 = vsyncpa [#allocation4], 0  ;;  %s503_s18 = smov [#allocation5]   ;;  %s409_s22 = scalar_lea.hbm %s602_s1, 1024 }
   0x3   :  { %s28_s19 = sshll.u32 %s503_s18, 4  ;;  %p410_p0 = scmp.ne.s32.totalorder %s602_s1, %s409_s22  ;;  %s29_s19 = int_to_ptr.vmem [resolvable:$true] %s28_s19 }
   0x4   :  { %p413_p1 = scmp.lt.u32.totalorder %s409_s22, %s602_s1 }
   0x6   :  { %p415_p2 = pnand %p413_p1, %p410_p0 }
   0x8   :  { %418 = shalt.err (!%p415_p2)
}
   0x9   :  { %s419_s27 = scalar_lea.vmem %s29_s19, 1024  ;;  %p424_p4 = scmp.lt.s32.totalorder %s29_s19, %s29_s19 }
   0xa   :  { %p420_p3 = scmp.ne.s32.totalorder %s29_s19, %s419_s27  ;;  %p425_p5 = scmp.lt.s32.totalorder %s419_s27, %s419_s27 }
   0xc   :  { %p426_p6 = por %p425_p5, %p424_p4 }
   0xe   :  { %p427_p7 = pnand %p426_p6, %p420_p3 }
  0x10   :  { %430 = shalt.err (!%p427_p7)
}
  0x11   :  { %s504_s28 = smov 64   ;;  %s505_s29 = smov 4  }
  0x12   :  { %34 = dma.hbm_to_vmem [thread:$0]  %s602_s1, 1024, %s29_s19, [#allocation6], %s504_s28, %s504_s28, %s505_s29  }
  0x13   :  { %s506_s7 = smov [#allocation2]   ;;  %s507_s9 = smov [#allocation7]  }
  0x14   :  { %s19_s8 = sshll.u32 %s506_s7, 4  ;;  %s42_s10 = sshll.u32 %s507_s9, 4  ;;  %s20_s8 = int_to_ptr.vmem [resolvable:$true] %s19_s8  ;;  %s43_s10 = int_to_ptr.vmem [resolvable:$true] %s42_s10 }
  0x15   :  { %s431_s13 = scalar_lea.hbm %s601_s0, 64 }
  0x16   :  { %p432_p8 = scmp.ne.s32.totalorder %s601_s0, %s431_s13  ;;  %p435_p9 = scmp.lt.u32.totalorder %s431_s13, %s601_s0 }
  0x18   :  { %p437_p10 = pnand %p435_p9, %p432_p8 }
  0x1a   :  { %440 = shalt.err (!%p437_p10)
}
  0x1b   :  { %s441_s1 = scalar_lea.vmem %s20_s8, 64  ;;  %p446_p12 = scmp.lt.s32.totalorder %s20_s8, %s20_s8 }
  0x1c   :  { %p442_p11 = scmp.ne.s32.totalorder %s20_s8, %s441_s1  ;;  %p447_p13 = scmp.lt.s32.totalorder %s441_s1, %s441_s1 }
  0x1e   :  { %p448_p0 = por %p447_p13, %p446_p12 }
  0x20   :  { %p449_p1 = pnand %p448_p0, %p442_p11 }
  0x22   :  { %452 = shalt.err (!%p449_p1)
}
  0x23   :  { %22 = dma.hbm_to_vmem [thread:$0]  %s601_s0, 64, %s20_s8, [#allocation3]  }
  0x24   :  { %s453_s22 = scalar_lea.hbm %s604_s3, 1024 }
  0x25   :  { %p454_p2 = scmp.ne.s32.totalorder %s604_s3, %s453_s22  ;;  %p457_p3 = scmp.lt.u32.totalorder %s453_s22, %s604_s3 }
  0x27   :  { %p459_p4 = pnand %p457_p3, %p454_p2 }
  0x29   :  { %462 = shalt.err (!%p459_p4)
}
  0x2a   :  { %s463_s27 = scalar_lea.vmem %s43_s10, 1024  ;;  %p468_p6 = scmp.lt.s32.totalorder %s43_s10, %s43_s10 }
  0x2b   :  { %p464_p5 = scmp.ne.s32.totalorder %s43_s10, %s463_s27  ;;  %p469_p7 = scmp.lt.s32.totalorder %s463_s27, %s463_s27 }
  0x2d   :  { %p470_p8 = por %p469_p7, %p468_p6 }
  0x2f   :  { %p471_p9 = pnand %p470_p8, %p464_p5 }
  0x31   :  { %474 = shalt.err (!%p471_p9)
}
  0x32   :  { %48 = dma.hbm_to_vmem [thread:$0]  %s604_s3, 1024, %s43_s10, [#allocation6], %s504_s28, %s504_s28, %s505_s29  }
  0x33   :  { %497 = dma.done.wait [#allocation3], 64  }
  0x34   :  { %498 = vsyncadd [#allocation3], 4294967232 }
  0x35   :  { %499 = dma.done.wait [#allocation6], 2048  }
  0x36   :  { %500 = vsyncadd [#allocation6], 4294965248  ;;  %v508_v0 = vmov 0.0   ;;  %vm509_vm0 = vmmov 0   ;;  %v391_v1 = vld [vmem:[#allocation5] sm:$0xff]   ;;  %v392_v2 = vld [vmem:[#allocation5 + $0x8] sm:$0xff]  }
  0x37   :  { %343 = vmatprep.subr.bf16.mxu0 %v508_v0  ;;  %359 = vmatprep.mubr.msk.bf16.mxu0 %vm509_vm0, %v508_v0  ;;  %v393_v3 = vld [vmem:[#allocation5 + $0x10] sm:$0xff]   ;;  %v399_v4 = vld [vmem:[#allocation7] sm:$0xff]   ;;  %v394_v5 = vld [vmem:[#allocation5 + $0x18] sm:$0xff]   ;;  %s510_s7 = smov [#allocation8]  }
  0x38   :  { %363 = vmatprep.subr.bf16.mxu1 %v508_v0  ;;  %379 = vmatprep.mubr.msk.bf16.mxu1 %vm509_vm0, %v508_v0  ;;  %v400_v6 = vld [vmem:[#allocation7 + $0x8] sm:$0xff]   ;;  %v395_v7 = vld [vmem:[#allocation5 + $0x20] sm:$0xff]   ;;  %v401_v8 = vld [vmem:[#allocation7 + $0x10] sm:$0xff]   ;;  %s297_s8 = sshll.u32 %s510_s7, 4  ;;  %s298_s8 = int_to_ptr.vmem [resolvable:$true] %s297_s8 }
  0x39   :  { %344 = vmatpush3.bf16.msra.mxu0 %v391_v1  ;;  %364 = vmatpush3.bf16.msra.mxu1 %v399_v4  ;;  %v396_v9 = vld [vmem:[#allocation5 + $0x28] sm:$0xff]   ;;  %v397_v10 = vld [vmem:[#allocation5 + $0x30] sm:$0xff]   ;;  %v398_v11 = vld [vmem:[#allocation5 + $0x38] sm:$0xff]   ;;  %p480_p11 = scmp.lt.s32.totalorder %s298_s8, %s298_s8 }
  0x3a   :  { %345 = vmatprep.subr.bf16.mxu0 %v508_v0  ;;  %365 = vmatprep.subr.bf16.mxu1 %v508_v0  ;;  %v61_v12 = vld [vmem:[#allocation2] sm:$0xf]  ;;  %v403_v14 = vld [vmem:[#allocation7 + $0x20] sm:$0xff]   ;;  %v404_v15 = vld [vmem:[#allocation7 + $0x28] sm:$0xff]  }
  0x3b   :  { %v402_v13 = vld [vmem:[#allocation7 + $0x18] sm:$0xff]   ;;  %v405_v16 = vld [vmem:[#allocation7 + $0x30] sm:$0xff]  }
  0x3c   :  { %v406_v17 = vld [vmem:[#allocation7 + $0x38] sm:$0xff]  }
  0x3d   :  { %346 = vmatpush3.bf16.msra.mxu0 %v392_v2  ;;  %366 = vmatpush3.bf16.msra.mxu1 %v400_v6  ;;  %v307_v18 = vld [vmem:[%s603_s2] ss:$0 sm:$0xff]  ;;  %s475_s2 = scalar_lea.vmem %s298_s8, 128 }
  0x3e   :  { %347 = vmatprep.subr.bf16.mxu0 %v508_v0  ;;  %367 = vmatprep.subr.bf16.mxu1 %v508_v0  ;;  %v316_v30 = vld [vmem:[%s605_s4] ss:$0 sm:$0xff]  ;;  %p476_p10 = scmp.ne.s32.totalorder %s298_s8, %s475_s2  ;;  %p481_p12 = scmp.lt.s32.totalorder %s475_s2, %s475_s2 }
  0x40   :  { %p482_p13 = por %p481_p12, %p480_p11 }
  0x41   :  { %348 = vmatpush3.bf16.msra.mxu0 %v393_v3  ;;  %368 = vmatpush3.bf16.msra.mxu1 %v401_v8 }
  0x42   :  { %349 = vmatprep.subr.bf16.mxu0 %v508_v0  ;;  %369 = vmatprep.subr.bf16.mxu1 %v508_v0  ;;  %p483_p0 = pnand %p482_p13, %p476_p10 }
  0x45   :  { %350 = vmatpush3.bf16.msra.mxu0 %v394_v5  ;;  %370 = vmatpush3.bf16.msra.mxu1 %v402_v13 }
  0x46   :  { %351 = vmatprep.subr.bf16.mxu0 %v508_v0  ;;  %371 = vmatprep.subr.bf16.mxu1 %v508_v0 }
  0x49   :  { %352 = vmatpush3.bf16.msra.mxu0 %v395_v7  ;;  %372 = vmatpush3.bf16.msra.mxu1 %v403_v14 }
  0x4a   :  { %353 = vmatprep.subr.bf16.mxu0 %v508_v0  ;;  %373 = vmatprep.subr.bf16.mxu1 %v508_v0 }
  0x4d   :  { %354 = vmatpush3.bf16.msra.mxu0 %v396_v9  ;;  %374 = vmatpush3.bf16.msra.mxu1 %v404_v15 }
  0x4e   :  { %355 = vmatprep.subr.bf16.mxu0 %v508_v0  ;;  %375 = vmatprep.subr.bf16.mxu1 %v508_v0 }
  0x51   :  { %356 = vmatpush3.bf16.msra.mxu0 %v397_v10  ;;  %376 = vmatpush3.bf16.msra.mxu1 %v405_v16 }
  0x52   :  { %357 = vmatprep.subr.bf16.mxu0 %v508_v0  ;;  %377 = vmatprep.subr.bf16.mxu1 %v508_v0 }
  0x55   :  { %358 = vmatpush3.bf16.msra.mxu0 %v398_v11  ;;  %378 = vmatpush3.bf16.msra.mxu1 %v406_v17 }
  0x58   :  { %360 = vmatmul.mubr.bf16.vlgmr.msra.gmra.mrb[0].mxu0 %v61_v12 }
 0x12b   :  { %v167_v19 = vpop.f32.mrb[0].mxu0 }
 0x12c   :  { %v168_v20 = vadd.f32 %v307_v18, %v167_v19  ;;  %v361_v21 = vpop.f32.mrb[1].mxu0 }
 0x12d   :  { %v170_v22 = vpop.f32.mrb[2].mxu0 }
 0x12e   :  { %v174_v23 = vmul.f32 0.70710677, %v168_v20  ;;  %v362_v24 = vpop.f32.mrb[3].mxu0  ;;  %v173_v26 = vmul.f32 0.5, %v168_v20 }
 0x130   :  { %407 = verf.f32 %v174_v23 }
 0x13a   :  { %v408_v25 = vpop.eup %407 }
 0x13b   :  { %v176_v27 = vadd.f32 1.0, %v408_v25 }
 0x13d   :  { %v177_v28 = vmul.f32 %v176_v27, %v173_v26 }
 0x13f   :  { %v178_v29 = vpack.c.bf16 %v177_v28, %v177_v28 }
 0x141   :  { %380 = vmatmul.mubr.bf16.vlgmr.msra.gmra.mrb[0].mxu1 %v178_v29 }
 0x214   :  { %v284_v31 = vpop.f32.mrb[0].mxu1 }
 0x215   :  { %v285_v32 = vadd.f32 %v316_v30, %v284_v31  ;;  %v381_v33 = vpop.f32.mrb[1].mxu1 }
 0x216   :  { %v287_v34 = vpop.f32.mrb[2].mxu1 }
 0x217   :  { %290 = vst [vmem:[#allocation8] sm:$0xff] %v285_v32  ;;  %v382_v35 = vpop.f32.mrb[3].mxu1 }
 0x218   :  { %486 = shalt.err (!%p483_p0)
}
 0x219   :  { %s487_s4 = scalar_lea.hbm %s606_s5, 128 }
 0x21a   :  { %p488_p1 = scmp.ne.s32.totalorder %s606_s5, %s487_s4  ;;  %p491_p2 = scmp.lt.u32.totalorder %s487_s4, %s606_s5 }
 0x21c   :  { %p493_p3 = pnand %p491_p2, %p488_p1 }
 0x21e   :  { %496 = shalt.err (!%p493_p3)
}
 0x21f   :  { %300 = dma.vmem_to_hbm [thread:$0]  %s298_s8, 128, %s606_s5, [#allocation4]  }
 0x220   :  { %501 = dma.done.wait [#allocation4], 128  }
 0x221   :  { %502 = vsyncadd [#allocation4], 4294967168 }
 0x222   :  { %304 = vsyncpa [#allocation3], 1 }
 0x223   :  { %305 = vsyncpa [#allocation6], 1 }
 0x224   :  { %306 = vsyncpa [#allocation4], 1 }

</bundles_post_ra>
